<compile_context>
chip_gen: v5e
topology: v5e:2x2
jax: 0.10.0
libtpu: 0.0.40
codegen_flags: <defaults>
</compile_context>

<pallas_src>
import jax
import jax.numpy as jnp
from jax.experimental import pallas as pl
from jax.experimental.pallas import tpu as pltpu


def layer_scale_init_eps(depth: int) -> float:
    if depth <= 18:
        return 0.1
    elif depth <= 24:
        return 1e-5
    return 1e-6


def _layer_scale_kernel(fn_x_ref, x_ref, scale_ref, o_ref):
    # fn_x_ref / x_ref / o_ref: (TILE_ROWS, W) blocks; scale_ref: (1, W).
    # Pure VPU broadcast multiply-add; DMA is the binding unit.
    o_ref[...] = (fn_x_ref[...] * scale_ref[...] + x_ref[...]).astype(o_ref.dtype)


def _choose_width(total: int, d: int) -> int:
    """Pick a lane-dense row width W (multiple of 128) when shapes permit."""
    if d % 128 == 0:
        return d
    for w in (1024, 512, 256, 128):
        if w % d == 0 and total % w == 0:
            return w
    # TODO(synk): D incommensurate with the 128-lane width -> masked stores.
    return d


def _choose_tile_rows(rows: int, width: int, itemsize: int) -> int:
    # ~2 MiB per streamed tile: 3 streams x 2 pipeline buffers ~= 12 MiB live,
    # comfortably inside scoped VMEM on v5e/v6e/v7x.
    target_bytes = 2 * 1024 * 1024
    tr = max(8, target_bytes // (width * itemsize))
    if tr >= rows:
        return rows
    return max(8, (tr // 8) * 8)  # keep sublane (8) alignment


def layer_scale(x, scale, fn):
    """y = fn(x) * scale + x.

    x:     (B, S, D)     — any float dtype; bf16 inputs halve HBM traffic.
    scale: (1, 1, D)
    fn:    JAX callable (B,S,D) -> (B,S,D)   (computed outside the kernel)
    """
    B, S, D = x.shape
    total = B * S * D

    fn_x = fn(x).astype(x.dtype)

    # Lane-dense flattening + row tiling.
    W = _choose_width(total, D)
    rows = total // W
    tile_rows = _choose_tile_rows(rows, W, x.dtype.itemsize)
    grid = (pl.cdiv(rows, tile_rows),)

    fn_x2 = fn_x.reshape(rows, W)
    x2 = x.reshape(rows, W)
    # Replicate the tiny (D,) scale across the folded width W (W % D == 0);
    # still a single (1, W) block, fetched once (constant index_map).
    scale_row = jnp.tile(scale.reshape(-1), W // D).reshape(1, W).astype(x.dtype)

    row_spec = pl.BlockSpec((tile_rows, W), lambda i: (i, 0))
    scale_spec = pl.BlockSpec((1, W), lambda i: (0, 0))

    out2 = pl.pallas_call(
        _layer_scale_kernel,
        out_shape=jax.ShapeDtypeStruct((rows, W), x.dtype),
        grid_spec=pltpu.PrefetchScalarGridSpec(
            num_scalar_prefetch=0,
            grid=grid,
            in_specs=[row_spec, row_spec, scale_spec],
            out_specs=row_spec,
        ),
        # fn_x is dead after this kernel -> reuse its HBM buffer for the output.
        input_output_aliases={0: 0},
        compiler_params=pltpu.CompilerParams(
            dimension_semantics=("parallel",),
            vmem_limit_bytes=64 * 1024 * 1024,
        ),
    )(fn_x2, x2, scale_row)

    return out2.reshape(B, S, D)


if __name__ == "__main__":
    key = jax.random.PRNGKey(0)

    # Small shapes consistent with the module: (batch, seq, dim).
    B, S, D = 2, 8, 32
    depth = 12                       # depth <= 18 -> init_eps = 0.1

    kx, kw = jax.random.split(key)
    x = jax.random.normal(kx, (B, S, D), dtype=jnp.float32)

    # Deterministic parameter init, matching torch.zeros(1,1,dim).fill_(eps).
    init_eps = layer_scale_init_eps(depth)
    scale = jnp.full((1, 1, D), init_eps, dtype=jnp.float32)

    # Deterministic stand-in for the arbitrary wrapped sub-module:
    # a fixed linear projection followed by GELU, computed in plain JAX.
    w = jax.random.normal(kw, (D, D), dtype=jnp.float32) * 0.02
    fn = lambda t: jax.nn.gelu(jnp.einsum("bsd,de->bse", t, w))

    # jit the whole path so the fn_x -> output aliasing actually takes effect.
    layer_scale_jit = jax.jit(lambda xx, sc: layer_scale(xx, sc, fn))

    y = layer_scale_jit(x, scale)
    jax.block_until_ready(y)

    # Reference check (pure JAX).
    y_ref = fn(x) * scale + x
    assert y.shape == (B, S, D)
    assert jnp.allclose(y, y_ref, atol=1e-5, rtol=1e-5)

    print("KERNEL_OK")
</pallas_src>

<mosaic_0001>
module attributes {stable_mosaic.version = 11 : i64} {
  func.func @_layer_scale_kernel(%arg0: i32, %arg1: memref<1x512xf32, #tpu.memory_space<vmem>>, %arg2: memref<1x512xf32, #tpu.memory_space<vmem>>, %arg3: memref<1x512xf32, #tpu.memory_space<vmem>>, %arg4: memref<1x512xf32, #tpu.memory_space<vmem>>) attributes {dimension_semantics = [#tpu.dimension_semantics<parallel>], iteration_bounds = array<i64: 1>, scalar_prefetch = 0 : i64, scratch_operands = 0 : i64, tpu.core_type = #tpu.core_type<tc>, window_params = [{transform_indices = @transform_0, window_bounds = array<i64: 1, 512>}, {transform_indices = @transform_1, window_bounds = array<i64: 1, 512>}, {pipeline_mode = #tpu.pipeline_mode<synchronous>, transform_indices = @transform_2, window_bounds = array<i64: 1, 512>}, {transform_indices = @transform_3, window_bounds = array<i64: 1, 512>}]} {
    %c0 = arith.constant 0 : index
    %c0_0 = arith.constant 0 : index
    %0 = vector.load %arg1[%c0, %c0_0] : memref<1x512xf32, #tpu.memory_space<vmem>>, vector<1x512xf32>
    %c0_1 = arith.constant 0 : index
    %c0_2 = arith.constant 0 : index
    %1 = vector.load %arg3[%c0_1, %c0_2] : memref<1x512xf32, #tpu.memory_space<vmem>>, vector<1x512xf32>
    %2 = arith.mulf %0, %1 : vector<1x512xf32>
    %c0_3 = arith.constant 0 : index
    %c0_4 = arith.constant 0 : index
    %3 = vector.load %arg2[%c0_3, %c0_4] : memref<1x512xf32, #tpu.memory_space<vmem>>, vector<1x512xf32>
    %4 = arith.addf %2, %3 : vector<1x512xf32>
    %c0_5 = arith.constant 0 : index
    %c0_6 = arith.constant 0 : index
    %5 = vector.load %arg4[%c0_5, %c0_6] : memref<1x512xf32, #tpu.memory_space<vmem>>, vector<1x512xf32>
    tpu.vector_store %arg4[%c0_5, %c0_6], %4 {strides = array<i32>} : memref<1x512xf32, #tpu.memory_space<vmem>>, vector<1x512xf32>,
    return
  }
  func.func @transform_0(%arg0: i32) -> (i32, i32) {
    %c0_i32 = arith.constant 0 : i32
    %c0_i32_0 = arith.constant 0 : i32
    return %arg0, %c0_i32 : i32, i32
  }
  func.func @transform_1(%arg0: i32) -> (i32, i32) {
    %c0_i32 = arith.constant 0 : i32
    %c0_i32_0 = arith.constant 0 : i32
    return %arg0, %c0_i32 : i32, i32
  }
  func.func @transform_2(%arg0: i32) -> (i32, i32) {
    %c0_i32 = arith.constant 0 : i32
    %c0_i32_0 = arith.constant 0 : i32
    %c0_i32_1 = arith.constant 0 : i32
    return %c0_i32, %c0_i32_0 : i32, i32
  }
  func.func @transform_3(%arg0: i32) -> (i32, i32) {
    %c0_i32 = arith.constant 0 : i32
    %c0_i32_0 = arith.constant 0 : i32
    return %arg0, %c0_i32 : i32, i32
  }
}

</mosaic_0001>

<bundles_post_ra>
// kernel: tile.7
= control target key start
LH: loop header
LB: loop body
LE: loop exit
PB: predicated region body
PF: predicated region fallthrough
CT: control target
= control target key end

     0   :  { %s56_s8 = smov 96   ;;  %s57_s11 = smov 32   ;;  %vm3_vm0 = vcmask 261120   ;;  %vm9_vm1 = vcmask 1048320   ;;  %vm15_vm2 = vcmask 785920   ;;  %vm21_vm3 = vcmask 523520   ;;  %s93_s0 = inlined_call_operand.vmem [shape: f32[16,32], index: 0, kind: input, shape index: {}]   ;;  %s94_s1 = inlined_call_operand.vmem [shape: f32[1,512], index: 1, kind: output, shape index: {}]  }
   0x1   :  { %v47_v0 = vld [vmem:[%s93_s0 + $0x3] ss:$4 sm:$0xf]   ;;  %v49_v1 = vld [vmem:[%s93_s0 + $0x1] ss:$4 sm:$0xf]  }
   0x2   :  { %7 = vrot.lane.b32.xlu0 %v47_v0, %s56_s8  ;;  %19 = vrot.lane.b32.xlu1 %v49_v1, %s57_s11  ;;  %v48_v2 = vld [vmem:[%s93_s0 + $0x2] ss:$4 sm:$0xf]   ;;  %s58_s14 = smov 64  }
   0x3   :  { %v2_v3 = vld [vmem:[%s93_s0] ss:$4 sm:$0xf]  }
   0x4   :  { %4 = vst.msk [vmem:[#allocation0] ss:$8 sm:$0xf] %vm3_vm0, %v2_v3  }
   0xa   :  { %13 = vrot.lane.b32.xlu0 %v48_v2, %s58_s14 }
  0x74   :  { %v8_v4 = vpop.permute.xlu0 %7   ;;  %v20_v5 = vpop.permute.xlu1 %19  }
  0x75   :  { %10 = vst.msk [vmem:[#allocation0] ss:$8 sm:$0xf] %vm9_vm1, %v8_v4  }
  0x7c   :  { %v14_v6 = vpop.permute.xlu0 %13  }
  0x7d   :  { %16 = vst.msk [vmem:[#allocation0] ss:$8 sm:$0xf] %vm15_vm2, %v14_v6  }
  0x7e   :  { %22 = vst.msk [vmem:[#allocation0] ss:$8 sm:$0xf] %vm21_vm3, %v20_v5  }
  0x85   :  { %v25_v7 = vld [vmem:[#allocation0] sm:$0x1]  ;;  %v30_v8 = vld [vmem:[#allocation0 + $0x8] sm:$0x1]  ;;  %v36_v9 = vld [vmem:[#allocation0 + $0x10] sm:$0x1] }
  0x86   :  { %28 = vst [vmem:[%s94_s1] sm:$0x1] %v25_v7  ;;  %v42_v10 = vld [vmem:[#allocation0 + $0x18] sm:$0x1] }
  0x87   :  { %50 = vst [vmem:[%s94_s1 + $0x1] sm:$0x1] %v30_v8 }
  0x88   :  { %51 = vst [vmem:[%s94_s1 + $0x2] sm:$0x1] %v36_v9 }
  0x89   :  { %52 = vst [vmem:[%s94_s1 + $0x3] sm:$0x1] %v42_v10 }

// kernel: tile.6
= control target key start
LH: loop header
LB: loop body
LE: loop exit
PB: predicated region body
PF: predicated region fallthrough
CT: control target
= control target key end

     0   :  { %s28_s0 = inlined_call_operand.vmem [shape: f32[32], index: 0, kind: input, shape index: {}]   ;;  %s29_s1 = inlined_call_operand.vmem [shape: f32[16,32], index: 1, kind: output, shape index: {}]  }
   0x1   :  { %v4_v0 = vld [vmem:[%s28_s0] ss:$0 sm:$0xff] }
   0x2   :  { %5 = vst [vmem:[%s29_s1] sm:$0xff] %v4_v0 }
   0x3   :  { %8 = vst [vmem:[%s29_s1 + $0x8] sm:$0xff] %v4_v0 }

// kernel: _lambda_.1
= control target key start
LH: loop header
LB: loop body
LE: loop exit
PB: predicated region body
PF: predicated region fallthrough
CT: control target
= control target key end

     0   :  { %v19_v0 = vlaneseq  ;;  %s60_s0 = inlined_call_operand.vmem [shape: f32[1,512], index: 0, kind: input, shape index: {}, may-alias: {0,3}]   ;;  %s61_s1 = inlined_call_operand.vmem [shape: f32[1,512], index: 1, kind: input, shape index: {}]   ;;  %s62_s2 = inlined_call_operand.vmem [shape: f32[1,512], index: 2, kind: input, shape index: {}]   ;;  %s63_s3 = inlined_call_operand.vmem [shape: f32[1,512], index: 3, kind: output, shape index: {}, may-alias: {0,3}]  }
   0x1   :  { %v14_v1 = vld [vmem:[%s60_s0] sm:$0xf] }
   0x2   :  { %v15_v2 = vld [vmem:[%s62_s2] sm:$0xf]  ;;  %vm21_vm0 = vcmp.lt.s32.totalorder %v19_v0, 512 }
   0x3   :  { %v17_v3 = vld [vmem:[%s61_s1] sm:$0xf]  ;;  %v16_v4 = vmul.f32 %v15_v2, %v14_v1 }
   0x5   :  { %v18_v5 = vadd.f32 %v17_v3, %v16_v4 }
   0x7   :  { %23 = vst.msk [vmem:[%s63_s3] sm:$0xf] %vm21_vm0, %v18_v5 }

</bundles_post_ra>
